<compile_context>
chip_gen: v7x
topology: tpu7x:2x2x1
jax: 0.10.0
libtpu: 0.0.40
codegen_flags: <defaults>
</compile_context>

<pallas_src>
import functools
import math

import jax
import jax.numpy as jnp
from jax.experimental import pallas as pl
from jax.experimental.pallas import tpu as pltpu


def _round_up(x, m):
    return ((x + m - 1) // m) * m


# ---------------------------------------------------------------------------
# Kernel: per (batch, query-tile) step.
# ---------------------------------------------------------------------------
def _make_self_attn_kernel(add, dqp):
    def kernel(xfull_ref, wq_ref, bq_ref, wkv_ref, bkv_ref, gamma_ref,
               out_ref, kv_scr):
        qi = pl.program_id(1)
        TQ = out_ref.shape[1]

        # Fused K|V projection for the whole image, once per batch element.
        @pl.when(qi == 0)
        def _():
            xf = xfull_ref[0]                                   # (N, Cp) bf16
            kv = (jnp.dot(xf, wkv_ref[...],
                          preferred_element_type=jnp.float32)
                  + bkv_ref[...])                               # (N, Dqp+Dop) f32
            kv_scr[...] = kv.astype(kv_scr.dtype)               # store bf16

        # Query tile sliced from the resident full image (no second x stream).
        q0 = pl.multiple_of(qi * TQ, TQ)
        xq = xfull_ref[0, pl.ds(q0, TQ), :]                     # (TQ, Cp) bf16
        q = (jnp.dot(xq, wq_ref[...],
                     preferred_element_type=jnp.float32)
             + bq_ref[...])                                     # (TQ, Dqp) f32
        q = q.astype(jnp.bfloat16)                              # bf16 MXU operand

        k = kv_scr[:, :dqp]                                     # (N, Dqp) bf16
        v = kv_scr[:, dqp:]                                     # (N, Dop) bf16

        # energy[i, j] = <q_i, k_j>  (contract channel dim, no transpose copy)
        energy = jax.lax.dot_general(
            q, k, (((1,), (1,)), ((), ())),
            preferred_element_type=jnp.float32)                 # (TQ, N) f32

        # numerically-stable softmax, normalization deferred past the PV dot.
        m = jnp.max(energy, axis=-1, keepdims=True)
        p = jnp.exp(energy - m)                                 # f32 (EUP)
        l = jnp.sum(p, axis=-1, keepdims=True)                  # (TQ, 1) f32
        # TODO(synk): on v6e/v7x a bf16 exp roughly doubles EUP throughput.

        out = jnp.dot(p.astype(jnp.bfloat16), v,
                      preferred_element_type=jnp.float32)       # (TQ, Dop) f32
        out = out * pl.reciprocal(l, approx=True)               # EUP reciprocal

        g = gamma_ref[0, 0]
        res = g * out
        if add:
            res = res + xq.astype(jnp.float32)  # requires out_dim == in_dim
        out_ref[0] = res.astype(out_ref.dtype)

    return kernel


# ---------------------------------------------------------------------------
# Wrapper: NCHW in, NCHW out (matches the PyTorch module forward).
# ---------------------------------------------------------------------------
def self_attn_forward(x_nchw, wq, bq, wk, bk, wv, bv, gamma, *, add=False):
    B, C, W, H = x_nchw.shape
    dq = wq.shape[0]
    out_dim = wv.shape[0]
    N = W * H

    LANE = 128
    Cp = _round_up(C, LANE)
    Dqp = _round_up(dq, LANE)
    Dop = _round_up(out_dim, LANE)
    if add:
        assert out_dim == C, "residual add requires out_dim == in_dim"

    # channels-last bf16, zero-padded channels (padded q/k/v channels are
    # exactly 0, so they contribute nothing to dots / softmax / output).
    x_nc = jnp.transpose(x_nchw.reshape(B, C, N), (0, 2, 1)).astype(jnp.float32)
    x_nc = jnp.pad(x_nc, ((0, 0), (0, 0), (0, Cp - C))).astype(jnp.bfloat16)

    def pack_w(w, dp):
        d = w.shape[0]
        wm = jnp.zeros((Cp, dp), jnp.float32).at[:C, :d].set(
            jnp.transpose(w[:, :, 0, 0]).astype(jnp.float32))
        return wm.astype(jnp.bfloat16)

    def pack_b(b, dp):
        d = b.shape[0]
        return jnp.zeros((1, dp), jnp.float32).at[0, :d].set(
            b.astype(jnp.float32))

    wq_m = pack_w(wq, Dqp)
    bq_m = pack_b(bq, Dqp)
    # fused K|V projection weight / bias
    wkv_m = jnp.concatenate([pack_w(wk, Dqp), pack_w(wv, Dop)], axis=1)
    bkv_m = jnp.concatenate([pack_b(bk, Dqp), pack_b(bv, Dop)], axis=1)
    gamma_s = jnp.reshape(gamma.astype(jnp.float32), (1, 1))

    # query-tile size: bound the (TQ, N) energy tile; TQ must divide N.
    TQ = N
    for cand in (256, 128):
        if N % cand == 0:
            TQ = cand
            break
    nq = N // TQ

    kernel = _make_self_attn_kernel(add, Dqp)

    # Explicit VMEM budget (default scoped limit is only 16/32 MiB).
    bf2, f4 = 2, 4
    vmem_bytes = (
        2 * N * Cp * bf2                      # xfull (double-buffered, bf16)
        + 2 * Cp * Dqp * bf2                  # wq
        + 2 * Cp * (Dqp + Dop) * bf2          # wkv
        + 2 * (2 * Dqp + Dop) * f4            # biases
        + 2 * TQ * Dop * f4                   # output tiles (double-buffered)
        + N * (Dqp + Dop) * bf2               # KV scratch (bf16)
        + 2 * TQ * N * f4                     # energy / p live temporaries
        + TQ * (Dqp + Dop) * f4)              # q / out temporaries
    vmem_limit = min(max(int(vmem_bytes * 1.3), 32 * 1024 * 1024),
                     96 * 1024 * 1024)

    grid_spec = pltpu.PrefetchScalarGridSpec(
        num_scalar_prefetch=0,
        grid=(B, nq),
        in_specs=[
            # full image — block index constant across qi => one DMA per batch
            pl.BlockSpec((1, N, Cp), lambda b, qi: (b, 0, 0)),
            # projection weights / biases (fetched once: constant block index)
            pl.BlockSpec((Cp, Dqp), lambda b, qi: (0, 0)),
            pl.BlockSpec((1, Dqp), lambda b, qi: (0, 0)),
            pl.BlockSpec((Cp, Dqp + Dop), lambda b, qi: (0, 0)),
            pl.BlockSpec((1, Dqp + Dop), lambda b, qi: (0, 0)),
            # gamma scalar in SMEM
            pl.BlockSpec((1, 1), lambda b, qi: (0, 0),
                         memory_space=pltpu.MemorySpace.SMEM),
        ],
        out_specs=pl.BlockSpec((1, TQ, Dop), lambda b, qi: (b, qi, 0)),
        scratch_shapes=[
            pltpu.VMEM((N, Dqp + Dop), jnp.bfloat16),   # fused K|V, per batch
        ],
    )

    out_padded = pl.pallas_call(
        kernel,
        out_shape=jax.ShapeDtypeStruct((B, N, Dop), jnp.float32),
        grid_spec=grid_spec,
        compiler_params=pltpu.CompilerParams(
            dimension_semantics=("parallel", "arbitrary"),
            vmem_limit_bytes=vmem_limit),
    )(x_nc, wq_m, bq_m, wkv_m, bkv_m, gamma_s)

    out = out_padded[:, :, :out_dim]                       # drop padded lanes
    return jnp.transpose(out, (0, 2, 1)).reshape(B, out_dim, W, H)


# ---------------------------------------------------------------------------
# Pure-JAX reference (correctness check only, full f32).
# ---------------------------------------------------------------------------
def _reference_forward(x, wq, bq, wk, bk, wv, bv, gamma, add=False):
    B, C, W, H = x.shape
    N = W * H
    hp = jax.lax.Precision.HIGHEST

    def conv1x1(w, b):
        return (jnp.einsum('bchw,oc->bohw', x, w[:, :, 0, 0], precision=hp)
                + b.reshape(1, -1, 1, 1))

    q = conv1x1(wq, bq).reshape(B, -1, N)
    k = conv1x1(wk, bk).reshape(B, -1, N)
    v = conv1x1(wv, bv).reshape(B, -1, N)
    energy = jnp.einsum('bdn,bdm->bnm', q, k, precision=hp)      # (B, N, N)
    attn = jax.nn.softmax(energy, axis=-1)
    out = jnp.einsum('bcm,bnm->bcn', v, attn, precision=hp)      # (B, out, N)
    out = out.reshape(B, -1, W, H)
    out = gamma.reshape(()) * out
    if add:
        out = out + x
    return out


if __name__ == "__main__":
    # small shapes implied by the module: in_dim divisible by ratio=8
    B, C, W, H = 2, 32, 8, 8
    ratio = 8
    dq = C // ratio
    out_dim = C

    key = jax.random.PRNGKey(0)
    ks = jax.random.split(key, 4)

    x = jax.random.normal(ks[0], (B, C, W, H), dtype=jnp.float32)

    def conv_init(k, o, i):
        bound = 1.0 / math.sqrt(i)
        kw_, kb_ = jax.random.split(k)
        w = jax.random.uniform(kw_, (o, i, 1, 1), jnp.float32, -bound, bound)
        b = jax.random.uniform(kb_, (o,), jnp.float32, -bound, bound)
        return w, b

    wq, bq = conv_init(ks[1], dq, C)
    wk, bk = conv_init(ks[2], dq, C)
    wv, bv = conv_init(ks[3], out_dim, C)
    # nn.Parameter(torch.zeros(1)) is 0 at init; use a nonzero value so the
    # attention path is actually exercised by the check.
    gamma = jnp.array([0.7], dtype=jnp.float32)

    fwd = jax.jit(self_attn_forward, static_argnames=("add",))

    # bf16 MXU operands + approx reciprocal => loosened tolerance vs f32 ref.
    RTOL = ATOL = 3e-2

    # default path: add=False  (out = gamma * attention(x))
    out = jax.block_until_ready(fwd(x, wq, bq, wk, bk, wv, bv, gamma, add=False))
    ref = _reference_forward(x, wq, bq, wk, bk, wv, bv, gamma, add=False)
    assert out.shape == ref.shape, (out.shape, ref.shape)
    assert jnp.allclose(out, ref, rtol=RTOL, atol=ATOL), \
        float(jnp.max(jnp.abs(out - ref)))

    # residual path: add=True  (out = gamma * attention(x) + x)
    out2 = jax.block_until_ready(fwd(x, wq, bq, wk, bk, wv, bv, gamma, add=True))
    ref2 = _reference_forward(x, wq, bq, wk, bk, wv, bv, gamma, add=True)
    assert jnp.allclose(out2, ref2, rtol=RTOL, atol=ATOL), \
        float(jnp.max(jnp.abs(out2 - ref2)))

    # NOTE: the PyTorch forward returns only `out` (the attention matrix in the
    # docstring is not actually returned), so the kernel only emits `out`.
    print("KERNEL_OK")
</pallas_src>

<mosaic_0001>
module attributes {stable_mosaic.version = 11 : i64} {
  func.func @kernel(%arg0: i32, %arg1: i32, %arg2: memref<1x64x128xbf16, #tpu.memory_space<vmem>>, %arg3: memref<128x128xbf16, #tpu.memory_space<vmem>>, %arg4: memref<1x128xf32, #tpu.memory_space<vmem>>, %arg5: memref<128x256xbf16, #tpu.memory_space<vmem>>, %arg6: memref<1x256xf32, #tpu.memory_space<vmem>>, %arg7: memref<1x1xf32, #tpu.memory_space<smem>>, %arg8: memref<1x64x128xf32, #tpu.memory_space<vmem>>, %arg9: memref<64x256xbf16, #tpu.memory_space<vmem>>) attributes {dimension_semantics = [#tpu.dimension_semantics<parallel>, #tpu.dimension_semantics<arbitrary>], iteration_bounds = array<i64: 2, 1>, scalar_prefetch = 0 : i64, scratch_operands = 1 : i64, tpu.core_type = #tpu.core_type<tc>, window_params = [{transform_indices = @transform_0, window_bounds = array<i64: 1, 64, 128>}, {pipeline_mode = #tpu.pipeline_mode<synchronous>, transform_indices = @transform_1, window_bounds = array<i64: 128, 128>}, {pipeline_mode = #tpu.pipeline_mode<synchronous>, transform_indices = @transform_2, window_bounds = array<i64: 1, 128>}, {pipeline_mode = #tpu.pipeline_mode<synchronous>, transform_indices = @transform_3, window_bounds = array<i64: 128, 256>}, {pipeline_mode = #tpu.pipeline_mode<synchronous>, transform_indices = @transform_4, window_bounds = array<i64: 1, 256>}, {transform_indices = @transform_5, window_bounds = array<i64: 1, 1>}, {transform_indices = @transform_6, window_bounds = array<i64: 1, 64, 128>}]} {
    %c0_i32 = arith.constant 0 : i32
    %0 = arith.cmpi eq, %arg1, %c0_i32 : i32
    %1 = arith.extui %0 : i1 to i32
    %c0_i32_0 = arith.constant 0 : i32
    %2 = arith.cmpi ne, %1, %c0_i32_0 : i32
    scf.if %2 {
      %c0_18 = arith.constant 0 : index
      %c0_19 = arith.constant 0 : index
      %c0_20 = arith.constant 0 : index
      %35 = vector.load %arg2[%c0_18, %c0_19, %c0_20] : memref<1x64x128xbf16, #tpu.memory_space<vmem>>, vector<1x64x128xbf16>
      %36 = vector.shape_cast %35 : vector<1x64x128xbf16> to vector<64x128xbf16>
      %c0_21 = arith.constant 0 : index
      %c0_22 = arith.constant 0 : index
      %37 = vector.load %arg5[%c0_21, %c0_22] : memref<128x256xbf16, #tpu.memory_space<vmem>>, vector<128x256xbf16>
      %cst_23 = arith.constant dense<0.000000e+00> : vector<64x256xf32>
      %38 = tpu.matmul %36, %37, %cst_23 {dimension_numbers = #tpu.dot_dimension_numbers<[1], [0], [0], [1], [0, 0, 1, 1], [], []>} : vector<64x128xbf16>, vector<128x256xbf16>, vector<64x256xf32> -> vector<64x256xf32>
      %c0_24 = arith.constant 0 : index
      %c0_25 = arith.constant 0 : index
      %39 = vector.load %arg6[%c0_24, %c0_25] : memref<1x256xf32, #tpu.memory_space<vmem>>, vector<1x256xf32>
      %40 = vector.broadcast %39 : vector<1x256xf32> to vector<64x256xf32>
      %41 = arith.addf %38, %40 : vector<64x256xf32>
      %42 = arith.truncf %41 : vector<64x256xf32> to vector<64x256xbf16>
      %c0_26 = arith.constant 0 : index
      %c0_27 = arith.constant 0 : index
      %43 = vector.load %arg9[%c0_26, %c0_27] : memref<64x256xbf16, #tpu.memory_space<vmem>>, vector<64x256xbf16>
      tpu.vector_store %arg9[%c0_26, %c0_27], %42 {strides = array<i32>} : memref<64x256xbf16, #tpu.memory_space<vmem>>, vector<64x256xbf16>,
    } else {
    }
    %c64_i32 = arith.constant 64 : i32
    %3 = arith.muli %arg1, %c64_i32 : i32
    %4 = tpu.assume_multiple %3, 64 : i32
    %c0 = arith.constant 0 : index
    %5 = arith.index_cast %4 : i32 to index
    %c0_1 = arith.constant 0 : index
    %6 = vector.load %arg2[%c0, %5, %c0_1] : memref<1x64x128xbf16, #tpu.memory_space<vmem>>, vector<1x64x128xbf16>
    %7 = vector.shape_cast %6 : vector<1x64x128xbf16> to vector<64x128xbf16>
    %c0_2 = arith.constant 0 : index
    %c0_3 = arith.constant 0 : index
    %8 = vector.load %arg3[%c0_2, %c0_3] : memref<128x128xbf16, #tpu.memory_space<vmem>>, vector<128x128xbf16>
    %cst = arith.constant dense<0.000000e+00> : vector<64x128xf32>
    %9 = tpu.matmul %7, %8, %cst {dimension_numbers = #tpu.dot_dimension_numbers<[1], [0], [0], [1], [0, 0, 1, 1], [], []>} : vector<64x128xbf16>, vector<128x128xbf16>, vector<64x128xf32> -> vector<64x128xf32>
    %c0_4 = arith.constant 0 : index
    %c0_5 = arith.constant 0 : index
    %10 = vector.load %arg4[%c0_4, %c0_5] : memref<1x128xf32, #tpu.memory_space<vmem>>, vector<1x128xf32>
    %11 = vector.broadcast %10 : vector<1x128xf32> to vector<64x128xf32>
    %12 = arith.addf %9, %11 : vector<64x128xf32>
    %13 = arith.truncf %12 : vector<64x128xf32> to vector<64x128xbf16>
    %c0_6 = arith.constant 0 : index
    %c0_7 = arith.constant 0 : index
    %14 = vector.load %arg9[%c0_6, %c0_7] : memref<64x256xbf16, #tpu.memory_space<vmem>>, vector<64x128xbf16>
    %c0_8 = arith.constant 0 : index
    %c128 = arith.constant 128 : index
    %15 = vector.load %arg9[%c0_8, %c128] : memref<64x256xbf16, #tpu.memory_space<vmem>>, vector<64x128xbf16>
    %cst_9 = arith.constant dense<0.000000e+00> : vector<64x64xf32>
    %16 = tpu.matmul %13, %14, %cst_9 {dimension_numbers = #tpu.dot_dimension_numbers<[1], [1], [0], [0], [0, 0, 1, 0], [], []>} : vector<64x128xbf16>, vector<64x128xbf16>, vector<64x64xf32> -> vector<64x64xf32>
    %cst_10 = arith.constant dense<0xFF800000> : vector<64xf32>
    %17 = vector.multi_reduction <maximumf>, %16, %cst_10 [1] : vector<64x64xf32> to vector<64xf32>
    %18 = vector.shape_cast %17 : vector<64xf32> to vector<64x1xf32>
    %19 = vector.broadcast %18 : vector<64x1xf32> to vector<64x64xf32>
    %20 = arith.subf %16, %19 : vector<64x64xf32>
    %21 = math.exp %20 : vector<64x64xf32>
    %cst_11 = arith.constant dense<0.000000e+00> : vector<64xf32>
    %22 = vector.multi_reduction <add>, %21, %cst_11 [1] : vector<64x64xf32> to vector<64xf32>
    %23 = vector.shape_cast %22 : vector<64xf32> to vector<64x1xf32>
    %24 = arith.truncf %21 : vector<64x64xf32> to vector<64x64xbf16>
    %cst_12 = arith.constant dense<0.000000e+00> : vector<64x128xf32>
    %25 = tpu.matmul %24, %15, %cst_12 {dimension_numbers = #tpu.dot_dimension_numbers<[1], [0], [0], [1], [0, 0, 1, 1], [], []>} : vector<64x64xbf16>, vector<64x128xbf16>, vector<64x128xf32> -> vector<64x128xf32>
    %26 = tpu.reciprocal %23 {approx = true} : vector<64x1xf32> -> vector<64x1xf32>
    %27 = vector.broadcast %26 : vector<64x1xf32> to vector<64x128xf32>
    %28 = arith.mulf %25, %27 : vector<64x128xf32>
    %c0_13 = arith.constant 0 : index
    %c0_14 = arith.constant 0 : index
    %29 = memref.load %arg7[%c0_13, %c0_14] : memref<1x1xf32, #tpu.memory_space<smem>>
    %30 = vector.broadcast %29 : f32 to vector<64x128xf32>
    %31 = arith.mulf %30, %28 : vector<64x128xf32>
    %c0_15 = arith.constant 0 : index
    %c0_16 = arith.constant 0 : index
    %c0_17 = arith.constant 0 : index
    %32 = vector.load %arg8[%c0_15, %c0_16, %c0_17] : memref<1x64x128xf32, #tpu.memory_space<vmem>>, vector<1x64x128xf32>
    %33 = vector.shape_cast %32 : vector<1x64x128xf32> to vector<64x128xf32>
    %34 = vector.shape_cast %31 : vector<64x128xf32> to vector<1x64x128xf32>
    tpu.vector_store %arg8[%c0_15, %c0_16, %c0_17], %34 {strides = array<i32>} : memref<1x64x128xf32, #tpu.memory_space<vmem>>, vector<1x64x128xf32>,
    return
  }
  func.func @transform_0(%arg0: i32, %arg1: i32) -> (i32, i32, i32) {
    %c0_i32 = arith.constant 0 : i32
    %c0_i32_0 = arith.constant 0 : i32
    %c0_i32_1 = arith.constant 0 : i32
    return %arg0, %c0_i32, %c0_i32_0 : i32, i32, i32
  }
  func.func @transform_1(%arg0: i32, %arg1: i32) -> (i32, i32) {
    %c0_i32 = arith.constant 0 : i32
    %c0_i32_0 = arith.constant 0 : i32
    %c0_i32_1 = arith.constant 0 : i32
    return %c0_i32, %c0_i32_0 : i32, i32
  }
  func.func @transform_2(%arg0: i32, %arg1: i32) -> (i32, i32) {
    %c0_i32 = arith.constant 0 : i32
    %c0_i32_0 = arith.constant 0 : i32
    %c0_i32_1 = arith.constant 0 : i32
    return %c0_i32, %c0_i32_0 : i32, i32
  }
  func.func @transform_3(%arg0: i32, %arg1: i32) -> (i32, i32) {
    %c0_i32 = arith.constant 0 : i32
    %c0_i32_0 = arith.constant 0 : i32
    %c0_i32_1 = arith.constant 0 : i32
    return %c0_i32, %c0_i32_0 : i32, i32
  }
  func.func @transform_4(%arg0: i32, %arg1: i32) -> (i32, i32) {
    %c0_i32 = arith.constant 0 : i32
    %c0_i32_0 = arith.constant 0 : i32
    %c0_i32_1 = arith.constant 0 : i32
    return %c0_i32, %c0_i32_0 : i32, i32
  }
  func.func @transform_5(%arg0: i32, %arg1: i32) -> (i32, i32) {
    %c0_i32 = arith.constant 0 : i32
    %c0_i32_0 = arith.constant 0 : i32
    %c0_i32_1 = arith.constant 0 : i32
    return %c0_i32, %c0_i32_0 : i32, i32
  }
  func.func @transform_6(%arg0: i32, %arg1: i32) -> (i32, i32, i32) {
    %c0_i32 = arith.constant 0 : i32
    %c0_i32_0 = arith.constant 0 : i32
    return %arg0, %arg1, %c0_i32 : i32, i32, i32
  }
}

</mosaic_0001>

<bundles_post_ra>
// kernel: self_attn_forward.1
= control target key start
LH: loop header
LB: loop body
LE: loop exit
PB: predicated region body
PF: predicated region fallthrough
CT: control target
= control target key end

     0   :  { %s1325_s23 = smov 0   ;;  %s1327_s24 = smov 0   ;;  %s1504_s0 = inlined_call_operand.vmem [shape: bf16[2,64,128], index: 0, kind: input, shape index: {}]   ;;  %s1505_s1 = inlined_call_operand.vmem [shape: bf16[128,128], index: 1, kind: input, shape index: {}]   ;;  %s1506_s2 = inlined_call_operand.vmem [shape: f32[1,128], index: 2, kind: input, shape index: {}]   ;;  %s1507_s3 = inlined_call_operand.vmem [shape: bf16[128,256], index: 3, kind: input, shape index: {}]   ;;  %s1508_s4 = inlined_call_operand.vmem [shape: f32[1,256], index: 4, kind: input, shape index: {}]   ;;  %s1509_s5 = inlined_call_operand.<no memory space> [shape: f32[1,1], index: 5, kind: input, shape index: {}]   ;;  %s1510_s6 = inlined_call_operand.vmem [shape: f32[2,64,128], index: 6, kind: output, shape index: {}]  }
   0x1   :  { %11 = sst [smem:[#allocation3]] %s1509_s5  ;;  %s1329_s25 = smov 0  }
   0x2 LB: > { %s29_s5 = sadd.s32 1, %s1280_s24  ;;  %p1035_p0 = scmp.ge.s32.totalorder %s1284_s25, 1  ;;  %s1284_s25 = sphi %s1329_s25, %s17_s25   ;;  %s1280_s24 = sphi %s1327_s24, %s1512_s24   ;;  %s1276_s23 = sphi %s1325_s23, %s1511_s23  }
   0x3   : > { %p31_p1 = scmp.ge.s32.totalorder %s29_s5, 2  ;;  %p227_p2 = scmp.lt.s32.totalorder %s1284_s25, 3 }
   0x5   : > { %s1514_s5 = smov (%p31_p1, %s29_s5), 0  ;;  %p228_p3 = pnand %p1035_p0, %p227_p2 }
   0x6   : > { %v1190_v0 = vld [vmem:[%s1507_s3 + $0x4] ss:$8 sps:$4 sm:$0xff] (!%p228_p3)   ;;  %p261_p4 = scmp.lt.s32.totalorder (!%p228_p3), %s1276_s23, 1  ;;  %v1192_v1 = vld [vmem:[%s1507_s3] ss:$8 sps:$4 sm:$0xff] (!%p228_p3)   ;;  %v1286_v2 = vmov (!%p228_p3), 0   ;;  %v307_v33 = vlaneseq (!%p228_p3) }
   0x7   : > { %231 = sbr.rel (%p228_p3) target bundleno = 896 (0x380), region = 44  ;;  %453 = vmatprep.mubr.bf16.mxu0 (!%p228_p3), %v1286_v2  ;;  %421 = vmatprep.subr.bf16.mxu0 (!%p228_p3), %v1190_v0  ;;  %v1193_v3 = vld [vmem:[%s1507_s3 + $0x14] ss:$8 sps:$4 sm:$0xff] (!%p228_p3)   ;;  %v1195_v4 = vld [vmem:[%s1507_s3 + $0x10] ss:$8 sps:$4 sm:$0xff] (!%p228_p3)   ;;  %v1213_v9 = vld [vmem:[%s1505_s1] sm:$0xff] (!%p228_p3)  }
   0x8   : > { %422 = vmatpush1.bf16.msra.mxu0 (!%p228_p3), %v1192_v1  ;;  %v1196_v5 = vld [vmem:[%s1507_s3 + $0x24] ss:$8 sps:$4 sm:$0xff] (!%p228_p3)   ;;  %v1198_v6 = vld [vmem:[%s1507_s3 + $0x20] ss:$8 sps:$4 sm:$0xff] (!%p228_p3)   ;;  %v1199_v7 = vld [vmem:[%s1507_s3 + $0x34] ss:$8 sps:$4 sm:$0xff] (!%p228_p3)   ;;  %1109 = vmatprep.subr.bf16.mxu1 (!%p228_p3), %v1213_v9 }
   0x9   : > { %423 = vmatprep.subr.bf16.mxu0 (!%p228_p3), %v1193_v3  ;;  %v1201_v8 = vld [vmem:[%s1507_s3 + $0x30] ss:$8 sps:$4 sm:$0xff] (!%p228_p3)   ;;  %v1202_v10 = vld [vmem:[%s1507_s3 + $0x44] ss:$8 sps:$4 sm:$0xff] (!%p228_p3)   ;;  %v1204_v12 = vld [vmem:[%s1507_s3 + $0x40] ss:$8 sps:$4 sm:$0xff] (!%p228_p3)   ;;  %1110 = vmatpush3.bf16.msra.mxu1 (!%p228_p3), %v1213_v9 }
   0xa   : > { %v1216_v11 = vld [vmem:[%s1505_s1 + $0x8] sm:$0xff] (!%p228_p3)   ;;  %v1217_v13 = vld [vmem:[%s1505_s1 + $0x10] sm:$0xff] (!%p228_p3)   ;;  %v1219_v16 = vld [vmem:[%s1505_s1 + $0x18] sm:$0xff] (!%p228_p3)   ;;  %v308_v34 = vshrl.u32 (!%p228_p3), %v307_v33, 7  ;;  %vm760_vm0 = vcmask (!%p228_p3), 523264   ;;  %s930_s16 = sld [smem:[#allocation3]] (!%p228_p3) }
   0xb   : > { %1111 = vmatprep.subr.bf16.mxu1 (!%p228_p3), %v1216_v11  ;;  %v1205_v14 = vld [vmem:[%s1507_s3 + $0x54] ss:$8 sps:$4 sm:$0xff] (!%p228_p3)   ;;  %v1207_v15 = vld [vmem:[%s1507_s3 + $0x50] ss:$8 sps:$4 sm:$0xff] (!%p228_p3)   ;;  %v1208_v17 = vld [vmem:[%s1507_s3 + $0x64] ss:$8 sps:$4 sm:$0xff] (!%p228_p3)  }
   0xc   : > { %424 = vmatpush1.bf16.msra.mxu0 (!%p228_p3), %v1195_v4  ;;  %v1210_v18 = vld [vmem:[%s1507_s3 + $0x60] ss:$8 sps:$4 sm:$0xff] (!%p228_p3)   ;;  %v1211_v21 = vld [vmem:[%s1507_s3 + $0x74] ss:$8 sps:$4 sm:$0xff] (!%p228_p3)   ;;  %v1214_v22 = vld [vmem:[%s1507_s3 + $0x70] ss:$8 sps:$4 sm:$0xff] (!%p228_p3)  }
   0xd   : > { %425 = vmatprep.subr.bf16.mxu0 (!%p228_p3), %v1196_v5  ;;  %1112 = vmatpush3.bf16.msra.mxu1 (!%p228_p3), %v1216_v11  ;;  %v1220_v19 = vld [vmem:[%s1505_s1 + $0x20] sm:$0xff] (!%p228_p3)   ;;  %v1222_v23 = vld [vmem:[%s1505_s1 + $0x28] sm:$0xff] (!%p228_p3)   ;;  %v1223_v25 = vld [vmem:[%s1505_s1 + $0x30] sm:$0xff] (!%p228_p3)   ;;  %v309_v35 = vsub.s32 (!%p228_p3), 0, %v308_v34  ;;  %v313_v37 = vsub.s32 (!%p228_p3), 1, %v308_v34 }
   0xe   : > { %s1516_s23 = smov (!%p261_p4, %s1276_s23), 1  ;;  %1113 = vmatprep.subr.bf16.mxu1 %v1217_v13  ;;  %v1225_v26 = vld [vmem:[%s1505_s1 + $0x38] sm:$0xff]   ;;  %v305_v36 = vld [vmem:[%s1508_s4] sm:$0x3] }
   0xf   : > { %s1079_s14 = sshll.u32 %s1516_s23, 5  ;;  %v1438_v38 = vrot.slane %v305_v36, %v309_v35  ;;  %v1440_v40 = vrot.slane %v305_v36, %v313_v37  ;;  %v1060_v52 = vld [vmem:[%s1506_s2] ss:$0 sm:$0xff]  ;;  %s1080_s17 = sshll.u32 %s1516_s23, 6 }
  0x10   : > { %s1371_s19 = scalar_lea.vmem %s1504_s0, %s1079_s14  ;;  %426 = vmatpush1.bf16.msra.mxu0 %v1198_v6  ;;  %s1485_s21 = scalar_lea.vmem %s1510_s6, %s1080_s17 }
  0x11   : > { %427 = vmatprep.subr.bf16.mxu0 %v1199_v7  ;;  %1114 = vmatpush3.bf16.msra.mxu1 %v1217_v13  ;;  %v1226_v20 = vld [vmem:[%s1371_s19] sm:$0xff]   ;;  %v1218_v27 = vld [vmem:[%s1371_s19 + $0x8] sm:$0xff]   ;;  %v1228_v29 = vld [vmem:[%s1371_s19 + $0x10] sm:$0xff]  }
  0x12   : > { %1115 = vmatprep.subr.bf16.mxu1 %v1219_v16  ;;  %1125 = vmatprep.mubr.bf16.mxu1 %v1226_v20  ;;  %v1215_v24 = vld [vmem:[%s1371_s19] sm:$0xff]   ;;  %v1227_v28 = vld [vmem:[%s1371_s19 + $0x8] sm:$0xff]   ;;  %v1221_v30 = vld [vmem:[%s1371_s19 + $0x10] sm:$0xff]  }
  0x13   : > { %v1229_v31 = vld [vmem:[%s1371_s19 + $0x18] sm:$0xff]  }
  0x14   : > { %428 = vmatpush1.bf16.msra.mxu0 %v1201_v8  ;;  %v1224_v32 = vld [vmem:[%s1371_s19 + $0x18] sm:$0xff]  }
  0x15   : > { %429 = vmatprep.subr.bf16.mxu0 %v1202_v10  ;;  %1116 = vmatpush3.bf16.msra.mxu1 %v1219_v16 }
  0x16   : > { %1117 = vmatprep.subr.bf16.mxu1 %v1220_v19 }
  0x18   : > { %430 = vmatpush1.bf16.msra.mxu0 %v1204_v12 }
  0x19   : > { %431 = vmatprep.subr.bf16.mxu0 %v1205_v14  ;;  %1118 = vmatpush3.bf16.msra.mxu1 %v1220_v19 }
  0x1a   : > { %1119 = vmatprep.subr.bf16.mxu1 %v1222_v23 }
  0x1c   : > { %432 = vmatpush1.bf16.msra.mxu0 %v1207_v15 }
  0x1d   : > { %433 = vmatprep.subr.bf16.mxu0 %v1208_v17  ;;  %1120 = vmatpush3.bf16.msra.mxu1 %v1222_v23 }
  0x1e   : > { %1121 = vmatprep.subr.bf16.mxu1 %v1223_v25 }
  0x20   : > { %434 = vmatpush1.bf16.msra.mxu0 %v1210_v18 }
  0x21   : > { %435 = vmatprep.subr.bf16.mxu0 %v1211_v21  ;;  %1122 = vmatpush3.bf16.msra.mxu1 %v1223_v25 }
  0x22   : > { %1123 = vmatprep.subr.bf16.mxu1 %v1225_v26 }
  0x24   : > { %436 = vmatpush1.bf16.msra.mxu0 %v1214_v22 }
  0x25   : > { %1124 = vmatpush3.bf16.msra.mxu1 %v1225_v26 }
  0x27   : > { %454 = vmatmul.mubr.bf16.vlgmr.msra.gmra.mrb[0].mxu0 %v1215_v24 }
  0x28   : > { %463 = vmatprep.mubr.bf16.mxu0 %v1286_v2  ;;  %1126 = vmatmul.mubr.bf16.vlgmr.msra.gmra.mrb[0].mxu1 %v1227_v28 }
  0x29   : > { %1129 = vmatprep.mubr.bf16.mxu1 %v1228_v29 }
  0x2f   : > { %464 = vmatmul.mubr.bf16.gmra.mrb[4].mxu0 %v1218_v27 }
  0x30   : > { %473 = vmatprep.mubr.bf16.mxu0 %v1286_v2  ;;  %1130 = vmatmul.mubr.bf16.gmra.mrb[4].mxu1 %v1229_v31 }
  0x37   : > { %474 = vmatmul.mubr.bf16.gmra.mrb[8].mxu0 %v1221_v30 }
  0x38   : > { %483 = vmatprep.mubr.bf16.mxu0 %v1286_v2 }
  0x3f   : > { %484 = vmatmul.mubr.bf16.gmra.mrb[12].mxu0 %v1224_v32 }
  0xfa   : > { %v455_v39 = vpop.f32.mrb[0].mxu0 }
  0xfb   : > { %v457_v41 = vpop.f32.mrb[1].mxu0  ;;  %v456_v43 = vadd.f32 %v455_v39, %v1438_v38  ;;  %v1127_v57 = vpop.f32.mrb[0].mxu1 }
  0xfc   : > { %v459_v42 = vpop.f32.mrb[2].mxu0  ;;  %v458_v46 = vadd.f32 %v457_v41, %v1440_v40  ;;  %v661_v60 = vadd.f32 %v1127_v57, %v1060_v52  ;;  %v652_v61 = vpop.f32.mrb[1].mxu1 }
  0xfd   : > { %v460_v44 = vadd.f32 %v459_v42, %v1438_v38  ;;  %v461_v45 = vpop.f32.mrb[3].mxu0  ;;  %v653_v63 = vadd.f32 %v1060_v52, %v652_v61  ;;  %v1128_v0 = vpop.f32.mrb[2].mxu1 }
  0xfe   : > { %v462_v47 = vadd.f32 %v461_v45, %v1440_v40  ;;  %v664_v2 = vadd.f32 %v1128_v0, %v1060_v52  ;;  %v655_v3 = vpop.f32.mrb[3].mxu1 }
  0xff   : > { %v494_v48 = vpack.c.bf16 %v460_v44, %v456_v43  ;;  %v656_v4 = vadd.f32 %v1060_v52, %v655_v3 }
 0x100   : > { %v495_v49 = vpack.c.bf16 %v462_v47, %v458_v46  ;;  %v684_v6 = vpack.c.bf16 %v664_v2, %v661_v60 }
 0x101   : > { %1133 = vmatprep.subr.bf16.mxu0 %v494_v48  ;;  %v683_v8 = vpack.c.bf16 %v656_v4, %v653_v63 }
 0x102   : > { %v465_v50 = vpop.f32.mrb[4].mxu0  ;;  %1134 = vmatpush3.bf16.xpose.msra.mxu0 %v494_v48  ;;  %1149 = vmatprep.subr.bf16.mxu1 %v495_v49 }
 0x103   : > { %v467_v51 = vpop.f32.mrb[5].mxu0  ;;  %1150 = vmatpush3.bf16.msra.mxu1 %v495_v49  ;;  %v466_v54 = vadd.f32 %v465_v50, %v1438_v38  ;;  %v1131_v13 = vpop.f32.mrb[4].mxu1  ;;  %1141 = vmatprep.mubr.bf16.mxu0 %v683_v8 }
 0x104   : > { %v469_v53 = vpop.f32.mrb[6].mxu0  ;;  %v468_v58 = vadd.f32 %v467_v51, %v1440_v40  ;;  %v677_v16 = vadd.f32 %v1131_v13, %v1060_v52  ;;  %v668_v17 = vpop.f32.mrb[5].mxu1 }
 0x105   : > { %v470_v55 = vadd.f32 %v469_v53, %v1438_v38  ;;  %v471_v56 = vpop.f32.mrb[7].mxu0  ;;  %v669_v19 = vadd.f32 %v1060_v52, %v668_v17  ;;  %v1132_v20 = vpop.f32.mrb[6].mxu1 }
 0x106   : > { %v472_v59 = vadd.f32 %v471_v56, %v1440_v40  ;;  %v680_v22 = vadd.f32 %v1132_v20, %v1060_v52  ;;  %v671_v23 = vpop.f32.mrb[7].mxu1 }
 0x107   : > { %v496_v62 = vpack.c.bf16 %v470_v55, %v466_v54  ;;  %v672_v24 = vadd.f32 %v1060_v52, %v671_v23 }
 0x108   : > { %v497_v1 = vpack.c.bf16 %v472_v59, %v468_v58  ;;  %v686_v26 = vpack.c.bf16 %v680_v22, %v677_v16 }
 0x109   : > { %1135 = vmatprep.subr.bf16.mxu0 %v496_v62  ;;  %v685_v28 = vpack.c.bf16 %v672_v24, %v669_v19 }
 0x10a   : > { %v475_v5 = vpop.f32.mrb[8].mxu0  ;;  %1136 = vmatpush3.bf16.xpose.msra.mxu0 %v496_v62  ;;  %1151 = vmatprep.subr.bf16.mxu1 %v497_v1 }
 0x10b   : > { %v477_v7 = vpop.f32.mrb[9].mxu0  ;;  %1152 = vmatpush3.bf16.msra.mxu1 %v497_v1  ;;  %v476_v10 = vadd.f32 %v475_v5, %v1438_v38 }
 0x10c   : > { %v479_v9 = vpop.f32.mrb[10].mxu0  ;;  %v478_v14 = vadd.f32 %v477_v7, %v1440_v40 }
 0x10d   : > { %v480_v11 = vadd.f32 %v479_v9, %v1438_v38  ;;  %v481_v12 = vpop.f32.mrb[11].mxu0 }
 0x10e   : > { %v482_v15 = vadd.f32 %v481_v12, %v1440_v40 }
 0x10f   : > { %v498_v18 = vpack.c.bf16 %v480_v11, %v476_v10 }
 0x110   : > { %v499_v21 = vpack.c.bf16 %v482_v15, %v478_v14 }
 0x111   : > { %1137 = vmatprep.subr.bf16.mxu0 %v498_v18 }
 0x112   : > { %v485_v25 = vpop.f32.mrb[12].mxu0  ;;  %1138 = vmatpush3.bf16.xpose.msra.mxu0 %v498_v18  ;;  %1153 = vmatprep.subr.bf16.mxu1 %v499_v21 }
 0x113   : > { %v487_v27 = vpop.f32.mrb[13].mxu0  ;;  %1154 = vmatpush3.bf16.msra.mxu1 %v499_v21  ;;  %v486_v30 = vadd.f32 %v485_v25, %v1438_v38 }
 0x114   : > { %v489_v29 = vpop.f32.mrb[14].mxu0  ;;  %v488_v33 = vadd.f32 %v487_v27, %v1440_v40 }
 0x115   : > { %v490_v31 = vadd.f32 %v489_v29, %v1438_v38  ;;  %v491_v32 = vpop.f32.mrb[15].mxu0 }
 0x116   : > { %v492_v34 = vadd.f32 %v491_v32, %v1440_v40 }
 0x117   : > { %v500_v35 = vpack.c.bf16 %v490_v31, %v486_v30 }
 0x118   : > { %v501_v36 = vpack.c.bf16 %v492_v34, %v488_v33 }
 0x119   : > { %1139 = vmatprep.subr.bf16.mxu0 %v500_v35 }
 0x11a   : > { %1140 = vmatpush3.bf16.xpose.msra.mxu0 %v500_v35  ;;  %1155 = vmatprep.subr.bf16.mxu1 %v501_v36 }
 0x11b   : > { %1156 = vmatpush3.bf16.msra.mxu1 %v501_v36 }
 0x121   : > { %1142 = vmatmul.mubr.bf16.vlgmr.msra.gmra.mrb[16].mxu0 %v684_v6 }
 0x122   : > { %1145 = vmatprep.mubr.bf16.mxu0 %v685_v28 }
 0x129   : > { %1146 = vmatmul.mubr.bf16.gmra.mrb[20].mxu0 %v686_v26 }
 0x1f4   : > { %v1143_v37 = vpop.f32.mrb[16].mxu0 }
 0x1f5   : > { %v729_v39 = vpop.f32.mrb[17].mxu0  ;;  %v767_v41 = vsel %vm760_vm0, %v1143_v37, -inf }
 0x1f6   : > { %768 = vmax.xlane.f32.xlu1 %v767_v41  ;;  %v1144_v38 = vpop.f32.mrb[18].mxu0  ;;  %v761_v42 = vsel %vm760_vm0, %v729_v39, -inf }
 0x1f7   : > { %762 = vmax.xlane.f32.xlu0 %v761_v42  ;;  %v732_v40 = vpop.f32.mrb[19].mxu0  ;;  %v770_v43 = vsel %vm760_vm0, %v1144_v38, -inf }
 0x1f8   : > { %v764_v44 = vsel %vm760_vm0, %v732_v40, -inf }
 0x1fa   : > { %771 = vmax.xlane.f32.xlu1 %v770_v43  ;;  %v931_v43 = vstv %s930_s16 }
 0x1fb   : > { %765 = vmax.xlane.f32.xlu0 %v764_v44 }
 0x1fc   : > { %v1147_v45 = vpop.f32.mrb[20].mxu0 }
 0x1fd   : > { %v745_v46 = vpop.f32.mrb[21].mxu0  ;;  %v779_v51 = vsel %vm760_vm0, %v1147_v45, -inf }
 0x1fe   : > { %v1148_v47 = vpop.f32.mrb[22].mxu0  ;;  %v773_v48 = vsel %vm760_vm0, %v745_v46, -inf }
 0x1ff   : > { %774 = vmax.xlane.f32.xlu0 %v773_v48  ;;  %v748_v49 = vpop.f32.mrb[23].mxu0  ;;  %v782_v52 = vsel %vm760_vm0, %v1148_v47, -inf }
 0x200   : > { %v776_v50 = vsel %vm760_vm0, %v748_v49, -inf }
 0x201   : > { %777 = vmax.xlane.f32.xlu1 %v776_v50 }
 0x203   : > { %780 = vmax.xlane.f32.xlu0 %v779_v51 }
 0x205   : > { %783 = vmax.xlane.f32.xlu1 %v782_v52 }
 0x283   : > { %v769_v53 = vpop.xlane.xlu1 %768 }
 0x284   : > { %v787_v54 = vsub.f32 %v1143_v37, %v769_v53  ;;  %v763_v55 = vpop.xlane.xlu0 %762 }
 0x285   : > { %v785_v56 = vsub.f32 %v729_v39, %v763_v55 }
 0x286   : > { %v797_v57 = vmul.f32 1.442695, %v787_v54 }
 0x287   : > { %v793_v58 = vmul.f32 1.442695, %v785_v56  ;;  %v772_v59 = vpop.xlane.xlu1 %771 }
 0x288   : > { %1230 = vpow2.f32 %v797_v57  ;;  %v788_v60 = vsub.f32 %v1144_v38, %v772_v59  ;;  %v766_v61 = vpop.xlane.xlu0 %765 }
 0x289   : > { %v786_v62 = vsub.f32 %v732_v40, %v766_v61  ;;  %1232 = vpow2.f32 %v793_v58 }
 0x28a   : > { %v799_v63 = vmul.f32 1.442695, %v788_v60 }
 0x28b   : > { %v795_v0 = vmul.f32 1.442695, %v786_v62 }
 0x28c   : > { %1234 = vpow2.f32 %v799_v63  ;;  %v775_v1 = vpop.xlane.xlu0 %774 }
 0x28d   : > { %1236 = vpow2.f32 %v795_v0  ;;  %v789_v2 = vsub.f32 %v745_v46, %v775_v1 }
 0x28e   : > { %v778_v3 = vpop.xlane.xlu1 %777 }
 0x28f   : > { %v801_v4 = vmul.f32 1.442695, %v789_v2  ;;  %v790_v5 = vsub.f32 %v748_v49, %v778_v3 }
 0x290   : > { %v781_v6 = vpop.xlane.xlu0 %780 }
 0x291   : > { %1238 = vpow2.f32 %v801_v4  ;;  %v803_v7 = vmul.f32 1.442695, %v790_v5  ;;  %v791_v8 = vsub.f32 %v1147_v45, %v781_v6 }
 0x292   : > { %v1231_v9 = vpop.eup %1230  ;;  %v784_v10 = vpop.xlane.xlu1 %783 }
 0x293   : > { %1240 = vpow2.f32 %v803_v7  ;;  %v805_v11 = vmul.f32 1.442695, %v791_v8  ;;  %v792_v12 = vsub.f32 %v1148_v47, %v784_v10  ;;  %v815_v13 = vsel %vm760_vm0, %v1231_v9, 0.0  ;;  %v1233_v14 = vpop.eup %1232 }
 0x294   : > { %816 = vadd.xlane.f32.xlu0 %v815_v13  ;;  %v809_v19 = vsel %vm760_vm0, %v1233_v14, 0.0 }
 0x295   : > { %1242 = vpow2.f32 %v805_v11  ;;  %v807_v15 = vmul.f32 1.442695, %v792_v12 }
 0x296   : > { %v1235_v16 = vpop.eup %1234 }
 0x297   : > { %v1237_v17 = vpop.eup %1236  ;;  %v834_v18 = vpack.c.bf16 %v1235_v16, %v1231_v9  ;;  %1244 = vpow2.f32 %v807_v15  ;;  %v818_v20 = vsel %vm760_vm0, %v1235_v16, 0.0 }
 0x298   : > { %810 = vadd.xlane.f32.xlu0 %v809_v19  ;;  %819 = vadd.xlane.f32.xlu1 %v818_v20  ;;  %v833_v21 = vpack.c.bf16 %v1237_v17, %v1233_v14  ;;  %v812_v23 = vsel %vm760_vm0, %v1237_v17, 0.0 }
 0x29a   : > { %1157 = vmatprep.mubr.msk.bf16.mxu1 %vm760_vm0, %v833_v21 }
 0x29b   : > { %v1239_v22 = vpop.eup %1238  ;;  %1158 = vmatmul.mubr.msk.bf16.vlgmr.msra.gmra.mrb[8].mxu1 %vm760_vm0, %v834_v18 }
 0x29c   : > { %813 = vadd.xlane.f32.xlu1 %v812_v23  ;;  %v821_v24 = vsel %vm760_vm0, %v1239_v22, 0.0 }
 0x29d   : > { %v1241_v25 = vpop.eup %1240  ;;  %822 = vadd.xlane.f32.xlu0 %v821_v24 }
 0x29e   : > { %v835_v26 = vpack.c.bf16 %v1241_v25, %v1239_v22  ;;  %v824_v27 = vsel %vm760_vm0, %v1241_v25, 0.0 }
 0x29f   : > { %v1243_v28 = vpop.eup %1242 }
 0x2a0   : > { %1161 = vmatprep.mubr.msk.bf16.mxu1 %vm760_vm0, %v835_v26  ;;  %825 = vadd.xlane.f32.xlu1 %v824_v27  ;;  %v827_v29 = vsel %vm760_vm0, %v1243_v28, 0.0 }
 0x2a1   : > { %v1245_v30 = vpop.eup %1244  ;;  %828 = vadd.xlane.f32.xlu0 %v827_v29 }
 0x2a2   : > { %v836_v31 = vpack.c.bf16 %v1245_v30, %v1243_v28  ;;  %v830_v32 = vsel %vm760_vm0, %v1245_v30, 0.0 }
 0x2a4   : > { %1162 = vmatmul.mubr.msk.bf16.gmra.mrb[12].mxu1 %vm760_vm0, %v836_v31  ;;  %831 = vadd.xlane.f32.xlu1 %v830_v32 }
 0x321   : > { %v817_v33 = vpop.xlane.xlu0 %816 }
 0x322   : > { %1246 = vrcp.f32 %v817_v33 }
 0x325   : > { %v820_v34 = vpop.xlane.xlu1 %819  ;;  %v811_v35 = vpop.xlane.xlu0 %810 }
 0x326   : > { %1248 = vrcp.f32 %v811_v35 }
 0x327   : > { %1250 = vrcp.f32 %v820_v34 }
 0x329   : > { %v814_v36 = vpop.xlane.xlu1 %813 }
 0x32a   : > { %v823_v37 = vpop.xlane.xlu0 %822  ;;  %1252 = vrcp.f32 %v814_v36 }
 0x32c   : > { %v1247_v42 = vpop.eup %1246 }
 0x32d   : > { %v826_v39 = vpop.xlane.xlu1 %825 }
 0x32e   : > { %v829_v41 = vpop.xlane.xlu0 %828 }
 0x32f   : > { %1254 = vrcp.f32 %v829_v41 }
 0x330   : > { %1256 = vrcp.f32 %v823_v37  ;;  %v1249_v44 = vpop.eup %1248 }
 0x331   : > { %v832_v38 = vpop.xlane.xlu1 %831  ;;  %v1251_v47 = vpop.eup %1250 }
 0x332   : > { %1258 = vrcp.f32 %v832_v38 }
 0x333   : > { %1260 = vrcp.f32 %v826_v39 }
 0x334   : > { %v1253_v50 = vpop.eup %1252 }
 0x339   : > { %v1255_v58 = vpop.eup %1254 }
 0x33a   : > { %v1257_v60 = vpop.eup %1256 }
 0x33c   : > { %v1259_v63 = vpop.eup %1258 }
 0x33d   : > { %v1261_v2 = vpop.eup %1260 }
 0x36e   : > { %v1159_v40 = vpop.f32.mrb[8].mxu1 }
 0x36f   : > { %v924_v45 = vmul.f32 %v1247_v42, %v1159_v40  ;;  %v883_v46 = vpop.f32.mrb[9].mxu1 }
 0x370   : > { %v922_v48 = vmul.f32 %v1249_v44, %v883_v46  ;;  %v1160_v49 = vpop.f32.mrb[10].mxu1 }
 0x371   : > { %v934_v51 = vmul.f32 %v931_v43, %v924_v45  ;;  %v925_v52 = vmul.f32 %v1251_v47, %v1160_v49  ;;  %v886_v53 = vpop.f32.mrb[11].mxu1 }
 0x372   : > { %v932_v54 = vmul.f32 %v931_v43, %v922_v48  ;;  %v923_v55 = vmul.f32 %v1253_v50, %v886_v53 }
 0x373   : > { %942 = vst [vmem:[%s1485_s21 + $0x10] sm:$0xff] %v934_v51  ;;  %v935_v56 = vmul.f32 %v931_v43, %v925_v52 }
 0x374   : > { %940 = vst [vmem:[%s1485_s21] sm:$0xff] %v932_v54  ;;  %v933_v57 = vmul.f32 %v931_v43, %v923_v55 }
 0x375   : > { %943 = vst [vmem:[%s1485_s21 + $0x18] sm:$0xff] %v935_v56 }
 0x376   : > { %941 = vst [vmem:[%s1485_s21 + $0x8] sm:$0xff] %v933_v57 }
 0x377   : > { %v1163_v59 = vpop.f32.mrb[12].mxu1 }
 0x378   : > { %v928_v61 = vmul.f32 %v1255_v58, %v1163_v59  ;;  %v899_v62 = vpop.f32.mrb[13].mxu1 }
 0x379   : > { %v926_v0 = vmul.f32 %v1257_v60, %v899_v62  ;;  %v1164_v1 = vpop.f32.mrb[14].mxu1 }
 0x37a   : > { %v938_v3 = vmul.f32 %v931_v43, %v928_v61  ;;  %v929_v4 = vmul.f32 %v1259_v63, %v1164_v1  ;;  %v902_v5 = vpop.f32.mrb[15].mxu1 }
 0x37b   : > { %v936_v6 = vmul.f32 %v931_v43, %v926_v0  ;;  %v927_v7 = vmul.f32 %v1261_v2, %v902_v5 }
 0x37c   : > { %946 = vst [vmem:[%s1485_s21 + $0x30] sm:$0xff] %v938_v3  ;;  %v939_v8 = vmul.f32 %v931_v43, %v929_v4 }
 0x37d   : > { %944 = vst [vmem:[%s1485_s21 + $0x20] sm:$0xff] %v936_v6  ;;  %v937_v9 = vmul.f32 %v931_v43, %v927_v7 }
 0x37e   : > { %947 = vst [vmem:[%s1485_s21 + $0x38] sm:$0xff] %v939_v8 }
 0x37f   : > { %945 = vst [vmem:[%s1485_s21 + $0x28] sm:$0xff] %v937_v9 }
 0x380 PF: > { %s17_s25 = sadd.s32 1, %s1284_s25   ;;  %s1511_s23 = smov %s1280_s24 }
 0x381   : > { %p14_p5 = scmp.ge.s32.totalorder %s17_s25, 4   ;;  %s1512_s24 = smov %s1514_s5 }
 0x383   :  { %16 = sbr.rel (!%p14_p5) target bundleno = 2 (0x2), region = 79 }

</bundles_post_ra>
